<compile_context>
chip_gen: v6e
topology: v6e:2x2x1
jax: 0.10.0
libtpu: 0.0.40
codegen_flags: <defaults>
</compile_context>

<pallas_src>
import functools

import numpy as np
import jax
import jax.numpy as jnp
from jax.experimental import pallas as pl
from jax.experimental.pallas import tpu as pltpu


def _round_up(n, m):
    return ((n + m - 1) // m) * m


def _pad2(a, rows, cols):
    a = jnp.asarray(a, jnp.float32)
    return jnp.pad(a, ((0, rows - a.shape[0]), (0, cols - a.shape[1])))


def _pick_block_rows(batch, per_row_bytes, budget_bytes=20 * 1024 * 1024):
    """Batch tile: fits the VMEM activation budget, is a multiple of 8 (or ==
    batch), and yields >= 2 grid steps when batch > 8 so a v7x megacore can
    split rows across both TensorCores (no effect on single-TC v5e/v6e)."""
    if batch <= 8:
        return batch
    bb = min(batch, 128, max(8, budget_bytes // max(per_row_bytes, 1)))
    if bb >= batch:                 # would be a single grid step
        bb = (batch + 1) // 2       # -> at least 2 "parallel" steps
    bb = max(8, (bb // 8) * 8)      # sublane granule for partial tiling
    return min(bb, batch)


def _fqf_per_row_bytes(T, Cp, Lp, fdim):
    """Rough per-batch-row f32/bf16 working-set bytes of the fused kernel."""
    f32, bf16 = 4, 2
    act = (T * Cp * (f32 + bf16)          # cos (+ bf16 copy fed to MXU)
           + T * Lp * (3 * f32 + bf16)    # cos_x, emb*cos_x (+bf16), h
           + Lp * (f32 + bf16)            # emb (+ bf16 head activation)
           + T * f32)                     # q
    io = 2 * f32 * (fdim + T) + 2 * f32 * T   # double-buffered in/out rows
    return act + io


# ----------------------------------------------------------------------------
# Pallas kernels
# ----------------------------------------------------------------------------
def _head_kernel(x_ref, w_ref, b_ref, o_ref):
    """State embedding: relu(x @ W_head + b_head).  bf16 MXU, f32 accumulate."""
    y = jnp.dot(x_ref[...].astype(jnp.bfloat16), w_ref[...],
                preferred_element_type=jnp.float32)
    o_ref[...] = jnp.maximum(y + b_ref[...], 0.0).astype(o_ref.dtype)


def _fqf_kernel(x_ref, taus_ref, pis_ref, *refs, num_tau, has_head):
    """Fused FQF quantile head for one batch tile.

    x_ref   : (Bt, input_size) raw input (has_head=True)
              (Bt, Lp) padded state embedding (has_head=False)
    taus_ref: (Bt, T)
    out_ref : (Bt, T)  quantile values, lane-dense (output_size == 1)

    Partial last batch tile: OOB rows read unmasked garbage; every op here is
    row-local and the output write is masked, so valid rows are unaffected.
    """
    if has_head:
        (wh_ref, bh_ref, wc_ref, bc_ref, w1_ref, b1_ref,
         w2_ref, b2_ref, out_ref) = refs
        emb = jnp.dot(x_ref[...].astype(jnp.bfloat16), wh_ref[...],
                      preferred_element_type=jnp.float32)
        emb = jnp.maximum(emb + bh_ref[...], 0.0)                  # (Bt, Lp)
    else:
        wc_ref, bc_ref, w1_ref, b1_ref, w2_ref, b2_ref, out_ref = refs
        emb = x_ref[...]                                           # (Bt, Lp)

    taus = taus_ref[...]                                           # (Bt, T)
    bt = taus.shape[0]

    # cos(tau_i * pi_j): padded pis are 0 (cos=1) but the matching w_cos rows
    # are 0, so padding contributes nothing.  cos math stays f32 (VPU poly).
    cos = jnp.cos(taus[:, :, None] * pis_ref[...][None, :, :])     # (Bt, T, Cp)
    cos = cos.reshape(bt * num_tau, -1)                            # (Bt*T, Cp)

    cos_x = jnp.dot(cos.astype(jnp.bfloat16), wc_ref[...],
                    preferred_element_type=jnp.float32)
    cos_x = jnp.maximum(cos_x + bc_ref[...], 0.0)                  # (Bt*T, Lp)

    # Per-tau broadcast of the state embedding done in-register (no repeat).
    h = emb[:, None, :] * cos_x.reshape(bt, num_tau, -1)           # (Bt, T, Lp)
    h = h.reshape(bt * num_tau, -1)
    h = jnp.dot(h.astype(jnp.bfloat16), w1_ref[...],
                preferred_element_type=jnp.float32)
    h = jnp.maximum(h + b1_ref[...], 0.0)                          # (Bt*T, Lp)

    # ff_2 with output_size == 1: VPU multiply + lane reduction (no MXU),
    # stored lane-dense as (Bt, T).  b_ff2 is a scalar read from SMEM.
    q = jnp.sum(h.reshape(bt, num_tau, -1) * w2_ref[...][None, :, :], axis=-1)
    out_ref[...] = (q + b2_ref[0, 0]).astype(out_ref.dtype)        # (Bt, T)


# ----------------------------------------------------------------------------
# QVN module (parameters + wrappers around the kernels)
# ----------------------------------------------------------------------------
class QVNPallas:
    def __init__(self, input_size, output_size, layer_size, seed, N=32):
        # The PyTorch reference hard-codes out.view(batch, num_tau, 1).
        assert output_size == 1, "QVN quantile head assumes action_size == 1"
        self.input_size = input_size
        self.output_size = output_size
        self.layer_size = layer_size
        self.N = N
        self.n_cos = 2 * N
        # Lane-padded feature dims (exact math: padded rows/cols are zero).
        self.Lp = _round_up(layer_size, 128)
        self.Cp = _round_up(self.n_cos, 128)

        key = jax.random.PRNGKey(seed)
        ks = jax.random.split(key, 8)

        def kaiming(k, fan_in, fan_out):
            # kaiming_normal_(nonlinearity='relu'): std = sqrt(2 / fan_in)
            std = np.sqrt(2.0 / fan_in)
            return (std * jax.random.normal(k, (fan_in, fan_out))).astype(jnp.float32)

        def linear_default(k, fan_in, fan_out):
            bound = 1.0 / np.sqrt(fan_in)
            return jax.random.uniform(
                k, (fan_in, fan_out), minval=-bound, maxval=bound
            ).astype(jnp.float32)

        def bias_default(k, fan_in, fan_out):
            bound = 1.0 / np.sqrt(fan_in)
            return jax.random.uniform(
                k, (fan_out,), minval=-bound, maxval=bound
            ).astype(jnp.float32)

        # head / ff_1 get kaiming (weight_init); cos_embedding / ff_2 defaults.
        w_head = kaiming(ks[0], input_size, layer_size)
        b_head = bias_default(ks[1], input_size, layer_size)
        w_cos = linear_default(ks[2], self.n_cos, layer_size)
        b_cos = bias_default(ks[3], self.n_cos, layer_size)
        w_ff1 = kaiming(ks[4], layer_size, layer_size)
        b_ff1 = bias_default(ks[5], layer_size, layer_size)
        w_ff2 = linear_default(ks[6], layer_size, output_size)    # (L, 1)
        b_ff2 = bias_default(ks[7], layer_size, output_size)      # (1,)

        # Weights stored transposed vs nn.Linear ((in, out)), zero-padded to
        # lane multiples.  MXU operands are kept in bf16; biases / ff_2 stay
        # f32 (VPU path).
        self.w_head = _pad2(w_head, input_size, self.Lp).astype(jnp.bfloat16)
        self.b_head = _pad2(b_head.reshape(1, -1), 1, self.Lp)
        self.w_cos = _pad2(w_cos, self.Cp, self.Lp).astype(jnp.bfloat16)
        self.b_cos = _pad2(b_cos.reshape(1, -1), 1, self.Lp)
        self.w_ff1 = _pad2(w_ff1, self.Lp, self.Lp).astype(jnp.bfloat16)
        self.b_ff1 = _pad2(b_ff1.reshape(1, -1), 1, self.Lp)
        self.w_ff2_row = _pad2(w_ff2.T, 1, self.Lp)                # (1, Lp) f32
        self.b_ff2 = jnp.asarray(b_ff2, jnp.float32).reshape(1, 1)

        pis = np.zeros((1, self.Cp), dtype=np.float32)
        pis[0, : self.n_cos] = [np.pi * i for i in range(1, self.n_cos + 1)]
        self.pis = jnp.asarray(pis)

        self._vmem_limit = 32 * 1024 * 1024

    # forward_padded(): lane-padded (B, Lp) embedding — the fast interchange
    # format to feed back into get_quantiles(embedding=...) with zero copies.
    def forward_padded(self, x):
        x = jnp.asarray(x, jnp.float32)
        B = x.shape[0]
        per_row = 8 * (self.input_size + self.Lp) + 2 * self.input_size
        bb = _pick_block_rows(B, per_row)
        return pl.pallas_call(
            _head_kernel,
            out_shape=jax.ShapeDtypeStruct((B, self.Lp), jnp.float32),
            grid_spec=pltpu.PrefetchScalarGridSpec(
                num_scalar_prefetch=0,
                grid=(pl.cdiv(B, bb),),
                in_specs=[
                    pl.BlockSpec((bb, self.input_size), lambda i: (i, 0)),
                    pl.BlockSpec((self.input_size, self.Lp), lambda i: (0, 0)),
                    pl.BlockSpec((1, self.Lp), lambda i: (0, 0)),
                ],
                out_specs=pl.BlockSpec((bb, self.Lp), lambda i: (i, 0)),
            ),
            compiler_params=pltpu.CompilerParams(
                dimension_semantics=("parallel",),
                vmem_limit_bytes=self._vmem_limit),
        )(x, self.w_head, self.b_head)

    # forward(): semantic (B, layer_size) state embedding (matches PyTorch).
    def forward(self, x):
        return self.forward_padded(x)[:, : self.layer_size]

    # get_quantiles(): full FQF quantile head, one fused kernel.
    def get_quantiles(self, x_in, taus, embedding=None):
        taus = jnp.asarray(taus, jnp.float32)
        B, T = taus.shape

        if embedding is None:
            first = jnp.asarray(x_in, jnp.float32)             # (B, input_size)
            has_head = True
            fdim = self.input_size
        else:
            emb = jnp.asarray(embedding, jnp.float32)
            if emb.shape[1] != self.Lp:
                # External (B, layer_size) embedding: pad once.  Prefer passing
                # forward_padded(x) (already (B, Lp)) to avoid this HBM copy.
                emb = jnp.pad(emb, ((0, 0), (0, self.Lp - emb.shape[1])))
            first = emb                                        # (B, Lp)
            has_head = False
            fdim = self.Lp

        # Weight operands (constant index_map -> fetched once, stay resident);
        # head weights only when actually used.
        weight_ops, weight_specs = [], []
        if has_head:
            weight_ops += [self.w_head, self.b_head]
            weight_specs += [
                pl.BlockSpec((self.input_size, self.Lp), lambda i: (0, 0)),
                pl.BlockSpec((1, self.Lp), lambda i: (0, 0)),
            ]
        weight_ops += [self.w_cos, self.b_cos, self.w_ff1, self.b_ff1,
                       self.w_ff2_row, self.b_ff2]
        weight_specs += [
            pl.BlockSpec((self.Cp, self.Lp), lambda i: (0, 0)),
            pl.BlockSpec((1, self.Lp), lambda i: (0, 0)),
            pl.BlockSpec((self.Lp, self.Lp), lambda i: (0, 0)),
            pl.BlockSpec((1, self.Lp), lambda i: (0, 0)),
            pl.BlockSpec((1, self.Lp), lambda i: (0, 0)),
            # (1,1) scalar bias: SMEM, not a padded (8,128) VMEM tile.
            pl.BlockSpec(memory_space=pltpu.MemorySpace.SMEM),
        ]

        # Batch tile: bounded by a ~20 MiB activation budget (minus resident,
        # double-buffered weights) and >= 2 grid steps when batch allows.
        wbytes = 2 * sum(int(a.size) * a.dtype.itemsize
                         for a in weight_ops + [self.pis])
        budget = max(4 * 1024 * 1024, 20 * 1024 * 1024 - wbytes)
        per_row = _fqf_per_row_bytes(T, self.Cp, self.Lp, fdim)
        bb = _pick_block_rows(B, per_row, budget)

        in_specs = [
            pl.BlockSpec((bb, fdim), lambda i: (i, 0)),
            pl.BlockSpec((bb, T), lambda i: (i, 0)),
            pl.BlockSpec((1, self.Cp), lambda i: (0, 0)),
        ] + weight_specs
        operands = [first, taus, self.pis] + weight_ops

        flops = 2 * B * T * self.Lp * (self.Cp + self.Lp) + 4 * B * T * self.Lp
        if has_head:
            flops += 2 * B * self.input_size * self.Lp
        bytes_accessed = 4 * B * T + sum(int(a.size) * a.dtype.itemsize
                                         for a in operands)

        out = pl.pallas_call(
            functools.partial(_fqf_kernel, num_tau=T, has_head=has_head),
            out_shape=jax.ShapeDtypeStruct((B, T), jnp.float32),
            grid_spec=pltpu.PrefetchScalarGridSpec(
                num_scalar_prefetch=0,
                grid=(pl.cdiv(B, bb),),
                in_specs=in_specs,
                out_specs=pl.BlockSpec((bb, T), lambda i: (i, 0)),
            ),
            compiler_params=pltpu.CompilerParams(
                dimension_semantics=("parallel",),
                vmem_limit_bytes=self._vmem_limit),
            cost_estimate=pl.CostEstimate(
                flops=int(flops),
                transcendentals=int(B * T * self.Cp),
                bytes_accessed=int(bytes_accessed)),
        )(*operands)

        return out.reshape(B, T, 1)   # output_size == 1 (asserted in __init__)


# ----------------------------------------------------------------------------
# Pure-JAX reference mirroring the kernel's numerics (bf16 MXU operands with
# f32 accumulation, f32 elementwise), on the logical un-padded parameters.
# ----------------------------------------------------------------------------
def _reference(model, x, taus):
    L, C = model.layer_size, model.n_cos
    bf = jnp.bfloat16
    wh, bh = model.w_head[:, :L], model.b_head[0, :L]
    wc, bc = model.w_cos[:C, :L], model.b_cos[0, :L]
    w1, b1 = model.w_ff1[:L, :L], model.b_ff1[0, :L]
    w2, b2 = model.w_ff2_row[0, :L], model.b_ff2[0, 0]
    pis = model.pis[0, :C]

    emb = jnp.maximum(
        jnp.dot(x.astype(bf), wh, preferred_element_type=jnp.float32) + bh, 0.0)
    B, T = taus.shape
    cos = jnp.cos(taus[:, :, None] * pis[None, None, :]).reshape(B * T, C)
    cos_x = jnp.maximum(
        jnp.dot(cos.astype(bf), wc, preferred_element_type=jnp.float32) + bc,
        0.0).reshape(B, T, L)
    h = (emb[:, None, :] * cos_x).reshape(B * T, L)
    h = jnp.maximum(
        jnp.dot(h.astype(bf), w1, preferred_element_type=jnp.float32) + b1, 0.0)
    out = h @ w2 + b2
    return emb, out.reshape(B, T, 1)


if __name__ == "__main__":
    input_size = 32
    layer_size = 64
    output_size = 1   # action_size = 1 (quantile value head)
    N = 32
    batch = 4
    num_tau = 8       # keep num_tau a multiple of 8 (sublane-aligned reshapes)

    model = QVNPallas(input_size, output_size, layer_size, seed=0, N=N)

    key = jax.random.PRNGKey(0)
    kx, kt = jax.random.split(key)
    x = jax.random.normal(kx, (batch, input_size), dtype=jnp.float32)
    taus = jax.random.uniform(kt, (batch, num_tau), dtype=jnp.float32)

    emb_padded = model.forward_padded(x)                    # (B, Lp) interchange
    emb = emb_padded[:, :layer_size]                        # semantic (B, L)
    quantiles = model.get_quantiles(x, taus)                # (B, num_tau, 1)
    q_from_emb = model.get_quantiles(x, taus, embedding=emb_padded)
    jax.block_until_ready(emb_padded)
    jax.block_until_ready(quantiles)
    jax.block_until_ready(q_from_emb)

    emb_ref, q_ref = _reference(model, x, taus)
    assert emb.shape == (batch, layer_size)
    assert quantiles.shape == (batch, num_tau, 1)
    assert q_from_emb.shape == (batch, num_tau, 1)
    np.testing.assert_allclose(np.asarray(emb), np.asarray(emb_ref),
                               rtol=1e-3, atol=1e-3)
    np.testing.assert_allclose(np.asarray(quantiles), np.asarray(q_ref),
                               rtol=1e-3, atol=1e-3)
    np.testing.assert_allclose(np.asarray(q_from_emb), np.asarray(q_ref),
                               rtol=1e-3, atol=1e-3)

    print("KERNEL_OK")
</pallas_src>

<mosaic_0001>
module attributes {stable_mosaic.version = 11 : i64} {
  func.func @_head_kernel(%arg0: i32, %arg1: memref<4x32xf32, #tpu.memory_space<vmem>>, %arg2: memref<32x128xbf16, #tpu.memory_space<vmem>>, %arg3: memref<1x128xf32, #tpu.memory_space<vmem>>, %arg4: memref<4x128xf32, #tpu.memory_space<vmem>>) attributes {dimension_semantics = [#tpu.dimension_semantics<parallel>], iteration_bounds = array<i64: 1>, scalar_prefetch = 0 : i64, scratch_operands = 0 : i64, tpu.core_type = #tpu.core_type<tc>, window_params = [{transform_indices = @transform_0, window_bounds = array<i64: 4, 32>}, {pipeline_mode = #tpu.pipeline_mode<synchronous>, transform_indices = @transform_1, window_bounds = array<i64: 32, 128>}, {pipeline_mode = #tpu.pipeline_mode<synchronous>, transform_indices = @transform_2, window_bounds = array<i64: 1, 128>}, {transform_indices = @transform_3, window_bounds = array<i64: 4, 128>}]} {
    %c0 = arith.constant 0 : index
    %c0_0 = arith.constant 0 : index
    %0 = vector.load %arg1[%c0, %c0_0] : memref<4x32xf32, #tpu.memory_space<vmem>>, vector<4x32xf32>
    %1 = arith.truncf %0 : vector<4x32xf32> to vector<4x32xbf16>
    %c0_1 = arith.constant 0 : index
    %c0_2 = arith.constant 0 : index
    %2 = vector.load %arg2[%c0_1, %c0_2] : memref<32x128xbf16, #tpu.memory_space<vmem>>, vector<32x128xbf16>
    %cst = arith.constant dense<0.000000e+00> : vector<4x128xf32>
    %3 = tpu.matmul %1, %2, %cst {dimension_numbers = #tpu.dot_dimension_numbers<[1], [0], [0], [1], [0, 0, 1, 1], [], []>} : vector<4x32xbf16>, vector<32x128xbf16>, vector<4x128xf32> -> vector<4x128xf32>
    %c0_3 = arith.constant 0 : index
    %c0_4 = arith.constant 0 : index
    %4 = vector.load %arg3[%c0_3, %c0_4] : memref<1x128xf32, #tpu.memory_space<vmem>>, vector<1x128xf32>
    %5 = vector.broadcast %4 : vector<1x128xf32> to vector<4x128xf32>
    %6 = arith.addf %3, %5 : vector<4x128xf32>
    %cst_5 = arith.constant 0.000000e+00 : f32
    %7 = vector.broadcast %cst_5 : f32 to vector<4x128xf32>
    %8 = arith.maximumf %6, %7 : vector<4x128xf32>
    %c0_6 = arith.constant 0 : index
    %c0_7 = arith.constant 0 : index
    %9 = vector.load %arg4[%c0_6, %c0_7] : memref<4x128xf32, #tpu.memory_space<vmem>>, vector<4x128xf32>
    tpu.vector_store %arg4[%c0_6, %c0_7], %8 {strides = array<i32>} : memref<4x128xf32, #tpu.memory_space<vmem>>, vector<4x128xf32>,
    return
  }
  func.func @transform_0(%arg0: i32) -> (i32, i32) {
    %c0_i32 = arith.constant 0 : i32
    %c0_i32_0 = arith.constant 0 : i32
    return %arg0, %c0_i32 : i32, i32
  }
  func.func @transform_1(%arg0: i32) -> (i32, i32) {
    %c0_i32 = arith.constant 0 : i32
    %c0_i32_0 = arith.constant 0 : i32
    %c0_i32_1 = arith.constant 0 : i32
    return %c0_i32, %c0_i32_0 : i32, i32
  }
  func.func @transform_2(%arg0: i32) -> (i32, i32) {
    %c0_i32 = arith.constant 0 : i32
    %c0_i32_0 = arith.constant 0 : i32
    %c0_i32_1 = arith.constant 0 : i32
    return %c0_i32, %c0_i32_0 : i32, i32
  }
  func.func @transform_3(%arg0: i32) -> (i32, i32) {
    %c0_i32 = arith.constant 0 : i32
    %c0_i32_0 = arith.constant 0 : i32
    return %arg0, %c0_i32 : i32, i32
  }
}

</mosaic_0001>

<bundles_post_ra>
// kernel: tpu_custom_call.1
= control target key start
LH: loop header
LB: loop body
LE: loop exit
PB: predicated region body
PF: predicated region fallthrough
CT: control target
= control target key end

     0   :  { %8 = vsyncpa [#allocation3], 0  ;;  %s258_s0 = inlined_call_operand.hbm [shape: f32[4,32], index: 0, kind: input, shape index: {}]   ;;  %s259_s1 = inlined_call_operand.hbm [shape: bf16[32,128], index: 1, kind: input, shape index: {}]   ;;  %s260_s2 = inlined_call_operand.vmem [shape: f32[1,128], index: 2, kind: input, shape index: {}]   ;;  %s261_s3 = inlined_call_operand.hbm [shape: f32[4,128], index: 3, kind: output, shape index: {}]  }
   0x1   :  { %9 = vsyncpa [#allocation6], 0 }
   0x2   :  { %10 = vsyncpa [#allocation4], 0  ;;  %s219_s12 = smov [#allocation2]   ;;  %s220_s14 = smov [#allocation5]  }
   0x3   :  { %s17_s13 = sshll.u32 %s219_s12, 4  ;;  %s26_s15 = sshll.u32 %s220_s14, 4  ;;  %s18_s13 = int_to_ptr.vmem [resolvable:$true] %s17_s13  ;;  %s27_s15 = int_to_ptr.vmem [resolvable:$true] %s26_s15 }
   0x4   :  { %s161_s16 = scalar_lea.vmem %s18_s13, 64  ;;  %p166_p1 = scmp.lt.s32.totalorder %s18_s13, %s18_s13 }
   0x5   :  { %p162_p0 = scmp.ne.s32.totalorder %s18_s13, %s161_s16  ;;  %p167_p2 = scmp.lt.s32.totalorder %s161_s16, %s161_s16 }
   0x7   :  { %p168_p3 = por %p167_p2, %p166_p1 }
   0x9   :  { %p169_p4 = pnand %p168_p3, %p162_p0 }
   0xb   :  { %172 = shalt.err (!%p169_p4)
}
   0xc   :  { %20 = dma.hbm_to_vmem [thread:$0]  %s258_s0, 64, %s18_s13, [#allocation3]  }
   0xd   :  { %s181_s19 = scalar_lea.vmem %s27_s15, 256  ;;  %p186_p6 = scmp.lt.s32.totalorder %s27_s15, %s27_s15 }
   0xe   :  { %p182_p5 = scmp.ne.s32.totalorder %s27_s15, %s181_s19  ;;  %p187_p7 = scmp.lt.s32.totalorder %s181_s19, %s181_s19 }
  0x10   :  { %p188_p8 = por %p187_p7, %p186_p6 }
  0x12   :  { %p189_p9 = pnand %p188_p8, %p182_p5 }
  0x14   :  { %192 = shalt.err (!%p189_p9)
}
  0x15   :  { %s221_s20 = smov 64   ;;  %s222_s21 = smov 4  }
  0x16   :  { %32 = dma.hbm_to_vmem [thread:$0]  %s259_s1, 256, %s27_s15, [#allocation6], %s221_s20, %s221_s20, %s222_s21  }
  0x17   :  { %213 = dma.done.wait [#allocation3], 64  }
  0x18   :  { %214 = vsyncadd [#allocation3], 4294967232 }
  0x19   :  { %215 = dma.done.wait [#allocation6], 256  }
  0x1a   :  { %216 = vsyncadd [#allocation6], 4294967040  ;;  %v223_v0 = vmov 0.0   ;;  %vm224_vm0 = vmmov 0   ;;  %v151_v1 = vld [vmem:[#allocation5 + $0x8] sm:$0xff]   ;;  %v152_v2 = vld [vmem:[#allocation5] sm:$0xff]  }
  0x1b   :  { %136 = vmatprep.subr.bf16.mxu0 %v223_v0  ;;  %140 = vmatprep.mubr.msk.bf16.mxu0 %vm224_vm0, %v223_v0  ;;  %v42_v3 = vld [vmem:[#allocation2] sm:$0xf]  ;;  %vm67_vm1 = vcmask 261120   ;;  %s225_s1 = smov [#allocation7]  }
  0x1c   :  { %137 = vmatpush3.bf16.msra.mxu0 %v151_v1  ;;  %v43_v4 = vpack.c.bf16 %v42_v3, %v42_v3  ;;  %v129_v5 = vld [vmem:[%s260_s2] ss:$0 sm:$0xff]  ;;  %s119_s25 = sshll.u32 %s225_s1, 4  ;;  %s120_s25 = int_to_ptr.vmem [resolvable:$true] %s119_s25 }
  0x1d   :  { %138 = vmatprep.subr.bf16.mxu0 %v223_v0  ;;  %s193_s26 = scalar_lea.vmem %s120_s25, 64  ;;  %p198_p11 = scmp.lt.s32.totalorder %s120_s25, %s120_s25 }
  0x1e   :  { %p194_p10 = scmp.ne.s32.totalorder %s120_s25, %s193_s26  ;;  %p199_p12 = scmp.lt.s32.totalorder %s193_s26, %s193_s26 }
  0x20   :  { %139 = vmatpush3.bf16.msra.mxu0 %v152_v2  ;;  %p200_p13 = por %p199_p12, %p198_p11 }
  0x22   :  { %p201_p0 = pnand %p200_p13, %p194_p10 }
  0x23   :  { %141 = vmatmul.mubr.msk.bf16.vlgmr.msra.gmra.mxu0 %vm67_vm1, %v43_v4 }
  0xe3   :  { %v105_v6 = vpop.f32.mrf.mxu0 }
  0xe4   :  { %v106_v7 = vadd.f32 %v129_v5, %v105_v6 }
  0xe5   :  { %v142_v8 = vpop.f32.mrf.mxu0 }
  0xe6   :  { %v111_v9 = vmax.f32 %v106_v7, 0.0 }
  0xe7   :  { %v108_v10 = vpop.f32.mrf.mxu0 }
  0xe8   :  { %112 = vst [vmem:[#allocation7] sm:$0xf] %v111_v9 }
  0xe9   :  { %v143_v11 = vpop.f32.mrf.mxu0 }
  0xea   :  { %204 = shalt.err (!%p201_p0)
}
  0xeb   :  { %122 = dma.vmem_to_hbm [thread:$0]  %s120_s25, 64, %s261_s3, [#allocation4]  }
  0xec   :  { %217 = dma.done.wait [#allocation4], 64  }
  0xed   :  { %218 = vsyncadd [#allocation4], 4294967232 }
  0xee   :  { %126 = vsyncpa [#allocation3], 1 }
  0xef   :  { %127 = vsyncpa [#allocation6], 1 }
  0xf0   :  { %128 = vsyncpa [#allocation4], 1 }

</bundles_post_ra>
